<compile_context>
chip_gen: v7x
topology: tpu7x:2x2x1
jax: 0.10.0
libtpu: 0.0.40
codegen_flags: <defaults>
</compile_context>

<pallas_src>
import functools

import jax
import jax.numpy as jnp
from jax.experimental import pallas as pl
from jax.experimental.pallas import tpu as pltpu


def _round_up(n, m):
    return (n + m - 1) // m * m


def _pass1_kernel(x_ref, wl_ref, wht_ref, bh_ref, h_ref, stats_ref,
                  *, tile_b, batch, padded):
    # embedding = tanh(x @ W_l): bf16 MXU matmul with f32 accumulation.
    emb = jnp.tanh(
        jnp.dot(x_ref[...], wl_ref[...], preferred_element_type=jnp.float32))

    # h = emb @ W_h + b_h with N=2 done on the VPU (per-column multiply+sum),
    # W_h is passed pre-transposed as (2, E) so each row broadcasts on lanes.
    wht = wht_ref[...]                                            # (2, E) f32
    h0 = jnp.sum(emb * wht[0:1, :], axis=-1, keepdims=True) + bh_ref[0]
    h1 = jnp.sum(emb * wht[1:2, :], axis=-1, keepdims=True) + bh_ref[1]

    lane = jax.lax.broadcasted_iota(jnp.int32, (tile_b, 2), 1)
    h = jnp.where(lane == 0, h0, h1)                              # (tile_b, 2)
    h_ref[...] = h

    # Per-tile BatchNorm partial statistics (mask rows past the real batch).
    if padded:
        row = (pl.program_id(0) * tile_b
               + jax.lax.broadcasted_iota(jnp.int32, (tile_b, 1), 0))
        h = jnp.where(row < batch, h, 0.0)
    s1 = jnp.sum(h, axis=0, keepdims=True)                        # (1, 2)
    s2 = jnp.sum(h * h, axis=0, keepdims=True)                    # (1, 2)
    r = jax.lax.broadcasted_iota(jnp.int32, (8, 2), 0)
    stats_ref[...] = jnp.where(r == 0, s1, jnp.where(r == 1, s2, 0.0))


def _pass2_kernel(h_ref, params_ref, out_ref, *, tile_b):
    # params (SMEM): [scale0, scale1, shift0, shift1] with
    #   scale = gamma / sqrt(var + eps),  shift = beta - mean * scale
    h = h_ref[...]                                                # (tile_b, 2)
    t0 = jnp.tanh(h[:, 0:1] * params_ref[0] + params_ref[2])
    t1 = jnp.tanh(h[:, 1:2] * params_ref[1] + params_ref[3])
    d = t1 - t0                                                   # (tile_b, 1)
    lane = jax.lax.broadcasted_iota(jnp.int32, (tile_b, 2), 1)
    sign = jnp.where(lane == 0, -1.0, 1.0)
    # Exact 2-class softmax: p1 = sigmoid(t1 - t0), p0 = sigmoid(t0 - t1).
    out_ref[...] = 1.0 / (1.0 + jnp.exp(-d * sign))


def lid_forward(x, w_l, w_h, b_h, gamma, beta, *, tile_b=1024, eps=1e-5):
    batch, d_in = x.shape
    e_dim = w_l.shape[1]

    tile_b = max(8, _round_up(tile_b, 8))
    tb = min(tile_b, _round_up(batch, 8))
    b_pad = _round_up(batch, tb)
    nt = b_pad // tb

    # bf16 only for the HBM-heavy MXU operands; elementwise math stays f32.
    x_bf = x.astype(jnp.bfloat16)
    if b_pad != batch:
        x_bf = jnp.pad(x_bf, ((0, b_pad - batch), (0, 0)))
    wl_bf = w_l.astype(jnp.bfloat16)
    wht = jnp.asarray(w_h, jnp.float32).T.reshape(2, e_dim)
    bh = jnp.asarray(b_h, jnp.float32).reshape(2)

    # ---- pass 1: h = tanh(x @ W_l) @ W_h + b_h, plus per-tile BN partials.
    kern1 = functools.partial(_pass1_kernel, tile_b=tb, batch=batch,
                              padded=(b_pad != batch))
    cost1 = pl.CostEstimate(
        flops=2 * b_pad * d_in * e_dim + 4 * b_pad * e_dim,
        transcendentals=b_pad * e_dim,
        bytes_accessed=(b_pad * d_in * 2 + d_in * e_dim * 2 + 2 * e_dim * 4
                        + b_pad * 2 * 4 + nt * 8 * 2 * 4))
    h, stats = pl.pallas_call(
        kern1,
        grid=(nt,),
        in_specs=[
            pl.BlockSpec((tb, d_in), lambda i: (i, 0)),
            pl.BlockSpec((d_in, e_dim), lambda i: (0, 0)),
            pl.BlockSpec((2, e_dim), lambda i: (0, 0)),
            pl.BlockSpec(memory_space=pltpu.MemorySpace.SMEM),
        ],
        out_specs=[
            pl.BlockSpec((tb, 2), lambda i: (i, 0)),
            pl.BlockSpec((8, 2), lambda i: (i, 0)),
        ],
        out_shape=[
            jax.ShapeDtypeStruct((b_pad, 2), jnp.float32),
            jax.ShapeDtypeStruct((nt * 8, 2), jnp.float32),
        ],
        compiler_params=pltpu.CompilerParams(
            dimension_semantics=("parallel",),
            vmem_limit_bytes=32 * 1024 * 1024),
        cost_estimate=cost1,
    )(x_bf, wl_bf, wht, bh)

    # ---- BatchNorm1d training-mode statistics over the FULL batch
    # (biased variance, eps=1e-5), folded into a single scale/shift.
    st = stats.reshape(nt, 8, 2)
    ssum = jnp.sum(st[:, 0, :], axis=0)
    ssq = jnp.sum(st[:, 1, :], axis=0)
    mean = ssum / batch
    var = jnp.maximum(ssq / batch - mean * mean, 0.0)
    inv_std = jax.lax.rsqrt(var + eps)
    scale = jnp.asarray(gamma, jnp.float32).reshape(2) * inv_std
    shift = jnp.asarray(beta, jnp.float32).reshape(2) - mean * scale
    params = jnp.concatenate([scale, shift]).astype(jnp.float32)   # (4,)

    # ---- pass 2: tanh(BN(h)) then softmax over the 2 classes.
    kern2 = functools.partial(_pass2_kernel, tile_b=tb)
    cost2 = pl.CostEstimate(
        flops=12 * b_pad,
        transcendentals=4 * b_pad,
        bytes_accessed=2 * b_pad * 2 * 4)
    out = pl.pallas_call(
        kern2,
        grid=(nt,),
        in_specs=[
            pl.BlockSpec((tb, 2), lambda i: (i, 0)),
            pl.BlockSpec(memory_space=pltpu.MemorySpace.SMEM),
        ],
        out_specs=pl.BlockSpec((tb, 2), lambda i: (i, 0)),
        out_shape=jax.ShapeDtypeStruct((b_pad, 2), jnp.float32),
        compiler_params=pltpu.CompilerParams(
            dimension_semantics=("parallel",),
            vmem_limit_bytes=32 * 1024 * 1024),
        cost_estimate=cost2,
    )(h, params)

    return out[:batch]


def lid_reference(x, w_l, w_h, b_h, gamma, beta, eps=1e-5):
    # Mirrors the PyTorch forward; uses the same bf16 inputs for the first
    # matmul as the kernel so the comparison is apples-to-apples.
    emb = jnp.tanh(jnp.dot(x.astype(jnp.bfloat16), w_l.astype(jnp.bfloat16),
                           preferred_element_type=jnp.float32))
    h = emb @ jnp.asarray(w_h, jnp.float32) \
        + jnp.asarray(b_h, jnp.float32).reshape(1, 2)
    mean = jnp.mean(h, axis=0, keepdims=True)
    var = jnp.mean((h - mean) ** 2, axis=0, keepdims=True)
    hn = (h - mean) * jax.lax.rsqrt(var + eps)
    hn = hn * jnp.asarray(gamma, jnp.float32).reshape(1, 2) \
        + jnp.asarray(beta, jnp.float32).reshape(1, 2)
    return jax.nn.softmax(jnp.tanh(hn), axis=1)


if __name__ == "__main__":
    embedding_dim = 16
    hidden_dim = 64   # stored by the module, unused in forward
    input_dim = 32
    batch = 8

    key = jax.random.PRNGKey(0)
    kx, kl, kh, kb = jax.random.split(key, 4)
    x = jax.random.normal(kx, (batch, input_dim), jnp.float32)
    # nn.Linear weights stored pre-transposed as (in, out) so kernels do x @ W.
    w_l = jax.random.normal(kl, (input_dim, embedding_dim), jnp.float32) * 0.1
    w_h = jax.random.normal(kh, (embedding_dim, 2), jnp.float32) * 0.1
    b_h = jax.random.normal(kb, (2,), jnp.float32) * 0.1
    # BatchNorm1d(2) default affine init: weight=1, bias=0.
    gamma = jnp.ones((2,), jnp.float32)
    beta = jnp.zeros((2,), jnp.float32)

    out = jax.block_until_ready(lid_forward(x, w_l, w_h, b_h, gamma, beta))
    ref = lid_reference(x, w_l, w_h, b_h, gamma, beta)
    assert out.shape == (batch, 2)
    assert jnp.allclose(jnp.sum(out, axis=1), 1.0, atol=1e-5)
    assert jnp.allclose(out, ref, atol=1e-4, rtol=1e-4), (out, ref)

    # Multi-tile path (grid > 1, padded batch) to validate cross-tile BN stats.
    b2 = 272
    x2 = jax.random.normal(jax.random.PRNGKey(1), (b2, input_dim), jnp.float32)
    out2 = jax.block_until_ready(
        lid_forward(x2, w_l, w_h, b_h, gamma, beta, tile_b=128))
    ref2 = lid_reference(x2, w_l, w_h, b_h, gamma, beta)
    assert out2.shape == (b2, 2)
    assert jnp.allclose(jnp.sum(out2, axis=1), 1.0, atol=1e-5)
    assert jnp.allclose(out2, ref2, atol=1e-4, rtol=1e-4)

    print("KERNEL_OK")
</pallas_src>

<mosaic_0001>
module attributes {stable_mosaic.version = 11 : i64} {
  func.func @_pass1_kernel(%arg0: i32, %arg1: memref<8x32xbf16, #tpu.memory_space<vmem>>, %arg2: memref<32x16xbf16, #tpu.memory_space<vmem>>, %arg3: memref<2x16xf32, #tpu.memory_space<vmem>>, %arg4: memref<2xf32, #tpu.memory_space<smem>>, %arg5: memref<8x2xf32, #tpu.memory_space<vmem>>, %arg6: memref<8x2xf32, #tpu.memory_space<vmem>>) attributes {dimension_semantics = [#tpu.dimension_semantics<parallel>], iteration_bounds = array<i64: 1>, scalar_prefetch = 0 : i64, scratch_operands = 0 : i64, tpu.core_type = #tpu.core_type<tc>, window_params = [{transform_indices = @transform_0, window_bounds = array<i64: 8, 32>}, {pipeline_mode = #tpu.pipeline_mode<synchronous>, transform_indices = @transform_1, window_bounds = array<i64: 32, 16>}, {pipeline_mode = #tpu.pipeline_mode<synchronous>, transform_indices = @transform_2, window_bounds = array<i64: 2, 16>}, {transform_indices = @transform_3, window_bounds = array<i64: 2>}, {transform_indices = @transform_4, window_bounds = array<i64: 8, 2>}, {transform_indices = @transform_5, window_bounds = array<i64: 8, 2>}]} {
    %c0 = arith.constant 0 : index
    %c0_0 = arith.constant 0 : index
    %0 = vector.load %arg1[%c0, %c0_0] : memref<8x32xbf16, #tpu.memory_space<vmem>>, vector<8x32xbf16>
    %c0_1 = arith.constant 0 : index
    %c0_2 = arith.constant 0 : index
    %1 = vector.load %arg2[%c0_1, %c0_2] : memref<32x16xbf16, #tpu.memory_space<vmem>>, vector<32x16xbf16>
    %cst = arith.constant dense<0.000000e+00> : vector<8x16xf32>
    %2 = tpu.matmul %0, %1, %cst {dimension_numbers = #tpu.dot_dimension_numbers<[1], [0], [0], [1], [0, 0, 1, 1], [], []>} : vector<8x32xbf16>, vector<32x16xbf16>, vector<8x16xf32> -> vector<8x16xf32>
    %3 = math.tanh %2 : vector<8x16xf32>
    %c0_3 = arith.constant 0 : index
    %c0_4 = arith.constant 0 : index
    %4 = vector.load %arg3[%c0_3, %c0_4] : memref<2x16xf32, #tpu.memory_space<vmem>>, vector<2x16xf32>
    %5 = vector.extract_strided_slice %4 {offsets = [0, 0], sizes = [1, 16], strides = [1, 1]} : vector<2x16xf32> to vector<1x16xf32>
    %6 = vector.broadcast %5 : vector<1x16xf32> to vector<8x16xf32>
    %7 = arith.mulf %3, %6 : vector<8x16xf32>
    %cst_5 = arith.constant dense<0.000000e+00> : vector<8xf32>
    %8 = vector.multi_reduction <add>, %7, %cst_5 [1] : vector<8x16xf32> to vector<8xf32>
    %9 = vector.shape_cast %8 : vector<8xf32> to vector<8x1xf32>
    %c0_6 = arith.constant 0 : index
    %10 = memref.load %arg4[%c0_6] : memref<2xf32, #tpu.memory_space<smem>>
    %11 = vector.broadcast %10 : f32 to vector<8x1xf32>
    %12 = arith.addf %9, %11 : vector<8x1xf32>
    %13 = vector.extract_strided_slice %4 {offsets = [1, 0], sizes = [1, 16], strides = [1, 1]} : vector<2x16xf32> to vector<1x16xf32>
    %14 = vector.broadcast %13 : vector<1x16xf32> to vector<8x16xf32>
    %15 = arith.mulf %3, %14 : vector<8x16xf32>
    %cst_7 = arith.constant dense<0.000000e+00> : vector<8xf32>
    %16 = vector.multi_reduction <add>, %15, %cst_7 [1] : vector<8x16xf32> to vector<8xf32>
    %17 = vector.shape_cast %16 : vector<8xf32> to vector<8x1xf32>
    %c1 = arith.constant 1 : index
    %18 = memref.load %arg4[%c1] : memref<2xf32, #tpu.memory_space<smem>>
    %19 = vector.broadcast %18 : f32 to vector<8x1xf32>
    %20 = arith.addf %17, %19 : vector<8x1xf32>
    %21 = tpu.iota {dimensions = array<i32: 1>} : vector<8x2xi32>
    %c0_i32 = arith.constant 0 : i32
    %22 = vector.broadcast %c0_i32 : i32 to vector<8x2xi32>
    %23 = arith.cmpi eq, %21, %22 : vector<8x2xi32>
    %24 = vector.shape_cast %12 : vector<8x1xf32> to vector<8x1xf32>
    %25 = vector.broadcast %24 : vector<8x1xf32> to vector<8x2xf32>
    %26 = vector.shape_cast %20 : vector<8x1xf32> to vector<8x1xf32>
    %27 = vector.broadcast %26 : vector<8x1xf32> to vector<8x2xf32>
    %28 = arith.select %23, %25, %27 : vector<8x2xi1>, vector<8x2xf32>
    %c0_8 = arith.constant 0 : index
    %c0_9 = arith.constant 0 : index
    %29 = vector.load %arg5[%c0_8, %c0_9] : memref<8x2xf32, #tpu.memory_space<vmem>>, vector<8x2xf32>
    tpu.vector_store %arg5[%c0_8, %c0_9], %28 {strides = array<i32>} : memref<8x2xf32, #tpu.memory_space<vmem>>, vector<8x2xf32>,
    %cst_10 = arith.constant dense<0.000000e+00> : vector<2xf32>
    %30 = vector.multi_reduction <add>, %28, %cst_10 [0] : vector<8x2xf32> to vector<2xf32>
    %31 = vector.shape_cast %30 : vector<2xf32> to vector<1x2xf32>
    %32 = arith.mulf %28, %28 : vector<8x2xf32>
    %cst_11 = arith.constant dense<0.000000e+00> : vector<2xf32>
    %33 = vector.multi_reduction <add>, %32, %cst_11 [0] : vector<8x2xf32> to vector<2xf32>
    %34 = vector.shape_cast %33 : vector<2xf32> to vector<1x2xf32>
    %35 = tpu.iota {dimensions = array<i32: 0>} : vector<8x2xi32>
    %c0_i32_12 = arith.constant 0 : i32
    %36 = vector.broadcast %c0_i32_12 : i32 to vector<8x2xi32>
    %37 = arith.cmpi eq, %35, %36 : vector<8x2xi32>
    %c1_i32 = arith.constant 1 : i32
    %38 = vector.broadcast %c1_i32 : i32 to vector<8x2xi32>
    %39 = arith.cmpi eq, %35, %38 : vector<8x2xi32>
    %cst_13 = arith.constant 0.000000e+00 : f32
    %40 = vector.shape_cast %34 : vector<1x2xf32> to vector<1x2xf32>
    %41 = vector.broadcast %40 : vector<1x2xf32> to vector<8x2xf32>
    %42 = vector.broadcast %cst_13 : f32 to vector<8x2xf32>
    %43 = arith.select %39, %41, %42 : vector<8x2xi1>, vector<8x2xf32>
    %44 = vector.shape_cast %31 : vector<1x2xf32> to vector<1x2xf32>
    %45 = vector.broadcast %44 : vector<1x2xf32> to vector<8x2xf32>
    %46 = arith.select %37, %45, %43 : vector<8x2xi1>, vector<8x2xf32>
    %c0_14 = arith.constant 0 : index
    %c0_15 = arith.constant 0 : index
    %47 = vector.load %arg6[%c0_14, %c0_15] : memref<8x2xf32, #tpu.memory_space<vmem>>, vector<8x2xf32>
    tpu.vector_store %arg6[%c0_14, %c0_15], %46 {strides = array<i32>} : memref<8x2xf32, #tpu.memory_space<vmem>>, vector<8x2xf32>,
    return
  }
  func.func @transform_0(%arg0: i32) -> (i32, i32) {
    %c0_i32 = arith.constant 0 : i32
    %c0_i32_0 = arith.constant 0 : i32
    return %arg0, %c0_i32 : i32, i32
  }
  func.func @transform_1(%arg0: i32) -> (i32, i32) {
    %c0_i32 = arith.constant 0 : i32
    %c0_i32_0 = arith.constant 0 : i32
    %c0_i32_1 = arith.constant 0 : i32
    return %c0_i32, %c0_i32_0 : i32, i32
  }
  func.func @transform_2(%arg0: i32) -> (i32, i32) {
    %c0_i32 = arith.constant 0 : i32
    %c0_i32_0 = arith.constant 0 : i32
    %c0_i32_1 = arith.constant 0 : i32
    return %c0_i32, %c0_i32_0 : i32, i32
  }
  func.func @transform_3(%arg0: i32) -> i32 {
    %c0_i32 = arith.constant 0 : i32
    %c0_i32_0 = arith.constant 0 : i32
    return %c0_i32 : i32
  }
  func.func @transform_4(%arg0: i32) -> (i32, i32) {
    %c0_i32 = arith.constant 0 : i32
    %c0_i32_0 = arith.constant 0 : i32
    return %arg0, %c0_i32 : i32, i32
  }
  func.func @transform_5(%arg0: i32) -> (i32, i32) {
    %c0_i32 = arith.constant 0 : i32
    %c0_i32_0 = arith.constant 0 : i32
    return %arg0, %c0_i32 : i32, i32
  }
}

</mosaic_0001>

<bundles_post_ra>
// kernel: tpu_custom_call.1
= control target key start
LH: loop header
LB: loop body
LE: loop exit
PB: predicated region body
PF: predicated region fallthrough
CT: control target
= control target key end

     0   :  { %11 = vsyncpa [#allocation3], 0  ;;  %s250_s0 = inlined_call_operand.vmem [shape: bf16[8,32], index: 0, kind: input, shape index: {}]   ;;  %s251_s1 = inlined_call_operand.vmem [shape: bf16[32,16], index: 1, kind: input, shape index: {}]   ;;  %s252_s2 = inlined_call_operand.vmem [shape: f32[2,16], index: 2, kind: input, shape index: {}]   ;;  %s253_s3 = inlined_call_operand.vmem [shape: f32[2], index: 3, kind: input, shape index: {}]   ;;  %s254_s4 = inlined_call_operand.vmem [shape: f32[8,2], index: 4, kind: output, shape index: {0}]   ;;  %s255_s5 = inlined_call_operand.vmem [shape: f32[8,2], index: 5, kind: output, shape index: {1}]  }
   0x1   :  { %s24_s20 = sshll.u32 %s253_s3, 4  ;;  %s25_s20 = int_to_ptr.vmem [resolvable:$true] %s24_s20 }
   0x2   :  { %s178_s21 = scalar_lea.vmem %s25_s20, 16  ;;  %p183_p1 = scmp.lt.s32.totalorder %s25_s20, %s25_s20 }
   0x3   :  { %p179_p0 = scmp.ne.s32.totalorder %s25_s20, %s178_s21  ;;  %p184_p2 = scmp.lt.s32.totalorder %s178_s21, %s178_s21 }
   0x5   :  { %p185_p3 = por %p184_p2, %p183_p1 }
   0x7   :  { %p186_p4 = pnand %p185_p3, %p179_p0 }
   0x9   :  { %189 = shalt.err (!%p186_p4)
}
   0xa   :  { %s192_s22 = smov [#allocation2]  }
   0xb   :  { %27 = dma.vmem_to_smem %s25_s20, 16, %s192_s22, [#allocation3]  }
   0xc   :  { %190 = dma.done.wait [#allocation3], 16  }
   0xd   :  { %191 = vsyncadd [#allocation3], 4294967280 }
   0xe   :  { %31 = sfence }
   0xf   :  { %v174_v0 = vld [vmem:[%s251_s1] sm:$0xff]   ;;  %v193_v1 = vmov 0.0   ;;  %v175_v2 = vld [vmem:[%s251_s1 + $0x8] sm:$0xff]   ;;  %vm194_vm0 = vmmov 0   ;;  %vm50_vm1 = vcmask 261120   ;;  %v96_v4 = vlaneseq  ;;  %s159_s29 = sld [smem:[#allocation2 + $0x1]] }
  0x10   :  { %163 = vmatprep.subr.bf16.mxu0 %v193_v1  ;;  %167 = vmatprep.mubr.msk.bf16.mxu0 %vm194_vm0, %v193_v1  ;;  %v33_v3 = vld [vmem:[%s250_s0] sm:$0xf]  ;;  %vm101_vm2 = vcmask 130048   ;;  %s105_s0 = sld [smem:[#allocation2]]  ;;  %vm123_vm4 = vcmask 15360  }
  0x11   :  { %164 = vmatpush3.bf16.msra.mxu0 %v174_v0  ;;  %v97_v6 = vshrl.u32 %v96_v4, 7  ;;  %v95_v11 = vld [vmem:[%s252_s2] sm:$0x3]  ;;  %v120_v21 = vand.u32 127, %v96_v4 }
  0x12   :  { %165 = vmatprep.subr.bf16.mxu0 %v193_v1 }
  0x13   :  { %v98_v10 = vsub.s32 0, %v97_v6  ;;  %v110_v12 = vsub.s32 1, %v97_v6  ;;  %vm121_vm3 = vcmp.eq.s32.totalorder %v120_v21, 0  ;;  %vm143_vm5 = vcmp.eq.s32.totalorder %v97_v6, 1 }
  0x14   :  { %vm142_vm6 = vcmp.eq.s32.totalorder %v97_v6, 0 }
  0x15   :  { %166 = vmatpush3.bf16.msra.mxu0 %v175_v2  ;;  %v99_v13 = vrot.slane %v95_v11, %v98_v10  ;;  %v111_v14 = vrot.slane %v95_v11, %v110_v12  ;;  %v117_v23 = vstv %s159_s29 }
  0x16   :  { %v106_v22 = vstv %s105_s0 }
  0x18   :  { %168 = vmatmul.mubr.msk.bf16.vlgmr.msra.gmra.mrb[0].mxu0 %vm50_vm1, %v33_v3 }
  0xeb   :  { %v88_v5 = vpop.f32.mrb[0].mxu0 }
  0xec   :  { %176 = vtanh.f32 %v88_v5  ;;  %v169_v7 = vpop.f32.mrb[1].mxu0 }
  0xed   :  { %v91_v8 = vpop.f32.mrb[2].mxu0 }
  0xee   :  { %v170_v9 = vpop.f32.mrb[3].mxu0 }
  0xf6   :  { %v177_v15 = vpop.eup %176 }
  0xf7   :  { %v100_v16 = vmul.f32 %v177_v15, %v99_v13  ;;  %v112_v18 = vmul.f32 %v177_v15, %v111_v14 }
  0xf9   :  { %v102_v17 = vsel %vm101_vm2, %v100_v16, 0.0  ;;  %v113_v19 = vsel %vm101_vm2, %v112_v18, 0.0 }
  0xfa   :  { %103 = vadd.xlane.f32.xlu0 %v102_v17 }
  0xfe   :  { %114 = vadd.xlane.f32.xlu0 %v113_v19 }
 0x187   :  { %v104_v20 = vpop.xlane.xlu0 %103 }
 0x188   :  { %v107_v25 = vadd.f32 %v106_v22, %v104_v20 }
 0x18b   :  { %v115_v24 = vpop.xlane.xlu0 %114 }
 0x18c   :  { %v118_v26 = vadd.f32 %v117_v23, %v115_v24 }
 0x18e   :  { %v122_v27 = vsel %vm121_vm3, %v107_v25, %v118_v26 }
 0x18f   :  { %124 = vst.msk [vmem:[%s254_s4] sm:$0xff] %vm123_vm4, %v122_v27  ;;  %v125_v28 = vsel %vm123_vm4, %v122_v27, 0.0  ;;  %v132_v29 = vmul.f32 %v122_v27, %v122_v27 }
 0x190   :  { %v126_v30 = vrot.slane %v125_v28, 4 }
 0x191   :  { %v133_v31 = vsel %vm123_vm4, %v132_v29, 0.0 }
 0x192   :  { %v127_v32 = vadd.f32 %v126_v30, %v125_v28  ;;  %v134_v33 = vrot.slane %v133_v31, 4 }
 0x194   :  { %v128_v34 = vrot.slane %v127_v32, 2  ;;  %v135_v35 = vadd.f32 %v134_v33, %v133_v31 }
 0x196   :  { %v129_v36 = vadd.f32 %v128_v34, %v127_v32  ;;  %v136_v37 = vrot.slane %v135_v35, 2 }
 0x198   :  { %v137_v38 = vadd.f32 %v136_v37, %v135_v35  ;;  %v130_v39 = vrot.slane %v129_v36, 1 }
 0x19a   :  { %v138_v40 = vrot.slane %v137_v38, 1  ;;  %v131_v42 = vadd.f32 %v130_v39, %v129_v36 }
 0x19c   :  { %v139_v41 = vadd.f32 %v138_v40, %v137_v38 }
 0x19e   :  { %v144_v43 = vsel %vm143_vm5, %v139_v41, 0.0 }
 0x19f   :  { %v145_v44 = vsel %vm142_vm6, %v131_v42, %v144_v43 }
 0x1a0   :  { %146 = vst.msk [vmem:[%s255_s5] sm:$0xff] %vm123_vm4, %v145_v44 }
 0x1a1   :  { %155 = vsyncpa [#allocation3], 1 }

</bundles_post_ra>
